<compile_context>
chip_gen: v7x
topology: tpu7x:2x2x1
jax: 0.10.0
libtpu: 0.0.40
codegen_flags: <defaults>
</compile_context>

<pallas_src>
import jax
import jax.numpy as jnp
from jax.experimental import pallas as pl
from jax.experimental.pallas import tpu as pltpu

BN_EPS = 1e-5


def top_model_kernel(x_ref, w_ref, p_ref, o_ref):
    """x_ref: (20, B) fused+transposed input.
    w_ref: (4, 20, 20) weights in (out, in) orientation, zero padded.
    p_ref: (20, 9) parameter columns [g0, be0, g1, be1, g2, be2, g3, be3, b4],
           zero padded beyond each layer's true channel count.
    o_ref: (10, B) log-softmax output (transposed / lane-dense)."""
    B = x_ref.shape[1]
    inv_b = 1.0 / B
    ones_col = jnp.ones((B, 1), jnp.float32)     # shared by all 4 BN layers

    def bn_relu(h, col):
        """Training-mode BatchNorm1d + ReLU on a (20, B) activation.

        Single-pass stats: E[x] and E[x^2] via two independent ones-column
        matmuls (MXU); var = E[x^2] - mu^2 (clamped >= 0); gamma/beta/mu are
        folded into a single broadcast FMA.  Padded channels have gamma = 0,
        so they stay exactly 0 (and never produce NaN/Inf).
        """
        gamma = p_ref[:, col:col + 1]            # (20, 1)
        beta = p_ref[:, col + 1:col + 2]         # (20, 1)
        mu = jnp.dot(h, ones_col, preferred_element_type=jnp.float32) * inv_b
        ex2 = jnp.dot(h * h, ones_col, preferred_element_type=jnp.float32) * inv_b
        var = jnp.maximum(ex2 - mu * mu, 0.0)    # clamp guards tiny negative rounding
        scale = gamma * jax.lax.rsqrt(var + BN_EPS)
        shift = beta - mu * scale
        return jnp.maximum(h * scale + shift, 0.0)

    h = bn_relu(x_ref[...], 0)                                                 # bn0 + relu, (20, B)
    h = jnp.dot(w_ref[0], h, preferred_element_type=jnp.float32)               # fc1 (b1 BN-cancelled)
    h = bn_relu(h, 2)                                                          # bn1 + relu
    h = jnp.dot(w_ref[1], h, preferred_element_type=jnp.float32)               # fc2 (b2 BN-cancelled); rows 10:20 stay 0
    h = bn_relu(h, 4)                                                          # bn2 + relu (padded rows stay exactly 0)
    h = jnp.dot(w_ref[2], h, preferred_element_type=jnp.float32)               # fc3 (b3 BN-cancelled)
    h = bn_relu(h, 6)                                                          # bn3 + relu
    h = jnp.dot(w_ref[3], h, preferred_element_type=jnp.float32) + p_ref[:, 8:9]  # fc4 + b4

    # log_softmax over channels (sublane axis); only rows 0:10 are real logits,
    # and the padded rows are excluded here (single slice, right before softmax).
    logits = h[0:10, :]                                                        # (10, B)
    m = jnp.max(logits, axis=0, keepdims=True)                                 # (1, B)
    e = jnp.exp(logits - m)
    denom = jnp.dot(jnp.ones((1, 10), jnp.float32), e,
                    preferred_element_type=jnp.float32)                        # channel-sum on MXU, (1, B)
    lse = m + jnp.log(denom)
    o_ref[...] = (logits - lse).astype(o_ref.dtype)


@jax.jit
def top_model_forward(input_tensors, w_slab, p_slab):
    """input_tensors: list of (B, 10) bottom-model outputs (as in the module)."""
    x = jnp.concatenate(input_tensors, axis=1)        # producer-side fuse -> (B, 20)
    xt = x.T                                          # batch-in-lanes -> (20, B)
    B = xt.shape[1]

    padded_b = ((B + 127) // 128) * 128
    buf_bytes = 4 * 24 * padded_b                     # one (20, B) f32 buffer, tile-padded
    vmem_limit = int(min(32 * 1024 * 1024, max(4 * 1024 * 1024, 40 * buf_bytes)))

    vmem = pl.BlockSpec(memory_space=pltpu.MemorySpace.VMEM)   # whole-array blocks
    out_t = pl.pallas_call(
        top_model_kernel,
        out_shape=jax.ShapeDtypeStruct((10, B), jnp.float32),  # lane-dense output
        in_specs=[vmem, vmem, vmem],
        out_specs=vmem,
        compiler_params=pltpu.CompilerParams(vmem_limit_bytes=vmem_limit),
    )(xt, w_slab, p_slab)
    return out_t.T                                    # (B, 10) for the consumer


def init_params(key):
    """Deterministic params mirroring the PyTorch module.

    Linear weights: kaiming_normal_ (fan_in, relu gain), PyTorch (out, in)
    layout.  Biases: PyTorch default U(-1/sqrt(fan_in), 1/sqrt(fan_in)).
    BatchNorm1d: gamma = 1, beta = 0.
    """
    dims = [(20, 20), (20, 10), (10, 10), (10, 10)]   # (in_features, out_features)
    keys = jax.random.split(key, 8)
    params = {}
    for i, (fan_in, fan_out) in enumerate(dims, start=1):
        std = (2.0 / fan_in) ** 0.5
        w = std * jax.random.normal(keys[2 * (i - 1)], (fan_out, fan_in), jnp.float32)
        bound = 1.0 / (fan_in ** 0.5)
        b = jax.random.uniform(
            keys[2 * (i - 1) + 1], (1, fan_out), jnp.float32, -bound, bound
        )
        params[f"w{i}"] = w
        params[f"b{i}"] = b
    for i, c in enumerate([20, 20, 10, 10]):
        params[f"g{i}"] = jnp.ones((1, c), jnp.float32)
        params[f"be{i}"] = jnp.zeros((1, c), jnp.float32)
    return params


def pack_params(params):
    """Pack params into two zero-padded slabs (kernel inputs: 3 arrays total).

    w_slab[i] holds W_{i+1} in (out, in) orientation at sublane/lane offset 0.
    p_slab columns: [g0, be0, g1, be1, g2, be2, g3, be3, b4].
    b1..b3 are intentionally NOT packed: they are exactly cancelled by the
    training-mode BatchNorm immediately following each of fc1/fc2/fc3.
    Padded gamma/beta entries are 0 so padded channels remain exactly 0.
    """
    w_slab = jnp.zeros((4, 20, 20), jnp.float32)
    w_slab = w_slab.at[0, :20, :20].set(params["w1"])   # (20, 20)
    w_slab = w_slab.at[1, :10, :20].set(params["w2"])   # (10, 20)
    w_slab = w_slab.at[2, :10, :10].set(params["w3"])   # (10, 10)
    w_slab = w_slab.at[3, :10, :10].set(params["w4"])   # (10, 10)

    def col(v, c):
        return jnp.zeros((20,), jnp.float32).at[:c].set(v.reshape(-1))

    p_slab = jnp.stack(
        [
            col(params["g0"], 20), col(params["be0"], 20),
            col(params["g1"], 20), col(params["be1"], 20),
            col(params["g2"], 10), col(params["be2"], 10),
            col(params["g3"], 10), col(params["be3"], 10),
            col(params["b4"], 10),
        ],
        axis=1,
    )                                                    # (20, 9)
    return w_slab, p_slab


def reference_forward(input_tensors, params):
    """Pure-JAX reference of the original PyTorch forward (incl. b1..b3)."""
    x = jnp.concatenate(input_tensors, axis=1)

    def bn(x, g, b):
        mu = jnp.mean(x, axis=0, keepdims=True)
        var = jnp.mean((x - mu) ** 2, axis=0, keepdims=True)
        return (x - mu) / jnp.sqrt(var + BN_EPS) * g + b

    h = jnp.maximum(bn(x, params["g0"], params["be0"]), 0.0) @ params["w1"].T + params["b1"]
    h = jnp.maximum(bn(h, params["g1"], params["be1"]), 0.0) @ params["w2"].T + params["b2"]
    h = jnp.maximum(bn(h, params["g2"], params["be2"]), 0.0) @ params["w3"].T + params["b3"]
    h = jnp.maximum(bn(h, params["g3"], params["be3"]), 0.0) @ params["w4"].T + params["b4"]
    return jax.nn.log_softmax(h, axis=1)


if __name__ == "__main__":
    key = jax.random.PRNGKey(0)
    k_params, k_in0, k_in1 = jax.random.split(key, 3)

    params = init_params(k_params)
    w_slab, p_slab = pack_params(params)

    # Two bottom-model outputs of shape (B, 10) each (the wrapper fuses them
    # to (B, 20)), matching the split-learning setup of the original module.
    B = 8
    x0 = jax.random.normal(k_in0, (B, 10), jnp.float32)
    x1 = jax.random.normal(k_in1, (B, 10), jnp.float32)

    out = top_model_forward([x0, x1], w_slab, p_slab)
    out = jax.block_until_ready(out)

    assert out.shape == (B, 10) and out.dtype == jnp.float32
    # log_softmax rows must (approximately) sum to 1 in prob space.
    assert bool(jnp.all(jnp.abs(jnp.sum(jnp.exp(out), axis=1) - 1.0) < 1e-4))
    # Validate against the full reference (with b1..b3) — confirms the
    # bias-cancellation, padded-channel and single-pass-variance changes are
    # numerically faithful.
    ref = reference_forward([x0, x1], params)
    max_err = float(jnp.max(jnp.abs(out - ref)))
    assert max_err < 1e-3, max_err
    print("KERNEL_OK")
</pallas_src>

<mosaic_0001>
module attributes {stable_mosaic.version = 11 : i64} {
  func.func @top_model_kernel(%arg0: memref<20x8xf32, #tpu.memory_space<vmem>>, %arg1: memref<4x20x20xf32, #tpu.memory_space<vmem>>, %arg2: memref<20x9xf32, #tpu.memory_space<vmem>>, %arg3: memref<10x8xf32, #tpu.memory_space<vmem>>) attributes {dimension_semantics = [], scalar_prefetch = 0 : i64, scratch_operands = 0 : i64, tpu.core_type = #tpu.core_type<tc>} {
    %cst = arith.constant 1.000000e+00 : f32
    %0 = vector.broadcast %cst : f32 to vector<8x1xf32>
    %c0 = arith.constant 0 : index
    %c0_0 = arith.constant 0 : index
    %1 = vector.load %arg0[%c0, %c0_0] : memref<20x8xf32, #tpu.memory_space<vmem>>, vector<20x8xf32>
    %c0_1 = arith.constant 0 : index
    %c0_2 = arith.constant 0 : index
    %2 = vector.load %arg2[%c0_1, %c0_2] : memref<20x9xf32, #tpu.memory_space<vmem>>, vector<20x1xf32>
    %c0_3 = arith.constant 0 : index
    %c1 = arith.constant 1 : index
    %3 = vector.load %arg2[%c0_3, %c1] : memref<20x9xf32, #tpu.memory_space<vmem>>, vector<20x1xf32>
    %cst_4 = arith.constant dense<0.000000e+00> : vector<20x1xf32>
    %4 = tpu.matmul %1, %0, %cst_4 {dimension_numbers = #tpu.dot_dimension_numbers<[1], [0], [0], [1], [0, 0, 1, 1], [], []>} : vector<20x8xf32>, vector<8x1xf32>, vector<20x1xf32> -> vector<20x1xf32>
    %cst_5 = arith.constant 1.250000e-01 : f32
    %5 = vector.broadcast %cst_5 : f32 to vector<20x1xf32>
    %6 = arith.mulf %4, %5 : vector<20x1xf32>
    %7 = arith.mulf %1, %1 : vector<20x8xf32>
    %cst_6 = arith.constant dense<0.000000e+00> : vector<20x1xf32>
    %8 = tpu.matmul %7, %0, %cst_6 {dimension_numbers = #tpu.dot_dimension_numbers<[1], [0], [0], [1], [0, 0, 1, 1], [], []>} : vector<20x8xf32>, vector<8x1xf32>, vector<20x1xf32> -> vector<20x1xf32>
    %cst_7 = arith.constant 1.250000e-01 : f32
    %9 = vector.broadcast %cst_7 : f32 to vector<20x1xf32>
    %10 = arith.mulf %8, %9 : vector<20x1xf32>
    %11 = arith.mulf %6, %6 : vector<20x1xf32>
    %12 = arith.subf %10, %11 : vector<20x1xf32>
    %cst_8 = arith.constant 0.000000e+00 : f32
    %13 = vector.broadcast %cst_8 : f32 to vector<20x1xf32>
    %14 = arith.maximumf %12, %13 : vector<20x1xf32>
    %cst_9 = arith.constant 9.99999974E-6 : f32
    %15 = vector.broadcast %cst_9 : f32 to vector<20x1xf32>
    %16 = arith.addf %14, %15 : vector<20x1xf32>
    %17 = math.rsqrt %16 : vector<20x1xf32>
    %18 = arith.mulf %2, %17 : vector<20x1xf32>
    %19 = arith.mulf %6, %18 : vector<20x1xf32>
    %20 = arith.subf %3, %19 : vector<20x1xf32>
    %21 = vector.broadcast %18 : vector<20x1xf32> to vector<20x8xf32>
    %22 = arith.mulf %1, %21 : vector<20x8xf32>
    %23 = vector.broadcast %20 : vector<20x1xf32> to vector<20x8xf32>
    %24 = arith.addf %22, %23 : vector<20x8xf32>
    %cst_10 = arith.constant 0.000000e+00 : f32
    %25 = vector.broadcast %cst_10 : f32 to vector<20x8xf32>
    %26 = arith.maximumf %24, %25 : vector<20x8xf32>
    %c0_11 = arith.constant 0 : index
    %c0_12 = arith.constant 0 : index
    %c0_13 = arith.constant 0 : index
    %27 = vector.load %arg1[%c0_11, %c0_12, %c0_13] : memref<4x20x20xf32, #tpu.memory_space<vmem>>, vector<1x20x20xf32>
    %28 = vector.shape_cast %27 : vector<1x20x20xf32> to vector<20x20xf32>
    %cst_14 = arith.constant dense<0.000000e+00> : vector<20x8xf32>
    %29 = tpu.matmul %28, %26, %cst_14 {dimension_numbers = #tpu.dot_dimension_numbers<[1], [0], [0], [1], [0, 0, 1, 1], [], []>} : vector<20x20xf32>, vector<20x8xf32>, vector<20x8xf32> -> vector<20x8xf32>
    %c0_15 = arith.constant 0 : index
    %c2 = arith.constant 2 : index
    %30 = vector.load %arg2[%c0_15, %c2] : memref<20x9xf32, #tpu.memory_space<vmem>>, vector<20x1xf32>
    %c0_16 = arith.constant 0 : index
    %c3 = arith.constant 3 : index
    %31 = vector.load %arg2[%c0_16, %c3] : memref<20x9xf32, #tpu.memory_space<vmem>>, vector<20x1xf32>
    %cst_17 = arith.constant dense<0.000000e+00> : vector<20x1xf32>
    %32 = tpu.matmul %29, %0, %cst_17 {dimension_numbers = #tpu.dot_dimension_numbers<[1], [0], [0], [1], [0, 0, 1, 1], [], []>} : vector<20x8xf32>, vector<8x1xf32>, vector<20x1xf32> -> vector<20x1xf32>
    %cst_18 = arith.constant 1.250000e-01 : f32
    %33 = vector.broadcast %cst_18 : f32 to vector<20x1xf32>
    %34 = arith.mulf %32, %33 : vector<20x1xf32>
    %35 = arith.mulf %29, %29 : vector<20x8xf32>
    %cst_19 = arith.constant dense<0.000000e+00> : vector<20x1xf32>
    %36 = tpu.matmul %35, %0, %cst_19 {dimension_numbers = #tpu.dot_dimension_numbers<[1], [0], [0], [1], [0, 0, 1, 1], [], []>} : vector<20x8xf32>, vector<8x1xf32>, vector<20x1xf32> -> vector<20x1xf32>
    %cst_20 = arith.constant 1.250000e-01 : f32
    %37 = vector.broadcast %cst_20 : f32 to vector<20x1xf32>
    %38 = arith.mulf %36, %37 : vector<20x1xf32>
    %39 = arith.mulf %34, %34 : vector<20x1xf32>
    %40 = arith.subf %38, %39 : vector<20x1xf32>
    %cst_21 = arith.constant 0.000000e+00 : f32
    %41 = vector.broadcast %cst_21 : f32 to vector<20x1xf32>
    %42 = arith.maximumf %40, %41 : vector<20x1xf32>
    %cst_22 = arith.constant 9.99999974E-6 : f32
    %43 = vector.broadcast %cst_22 : f32 to vector<20x1xf32>
    %44 = arith.addf %42, %43 : vector<20x1xf32>
    %45 = math.rsqrt %44 : vector<20x1xf32>
    %46 = arith.mulf %30, %45 : vector<20x1xf32>
    %47 = arith.mulf %34, %46 : vector<20x1xf32>
    %48 = arith.subf %31, %47 : vector<20x1xf32>
    %49 = vector.broadcast %46 : vector<20x1xf32> to vector<20x8xf32>
    %50 = arith.mulf %29, %49 : vector<20x8xf32>
    %51 = vector.broadcast %48 : vector<20x1xf32> to vector<20x8xf32>
    %52 = arith.addf %50, %51 : vector<20x8xf32>
    %cst_23 = arith.constant 0.000000e+00 : f32
    %53 = vector.broadcast %cst_23 : f32 to vector<20x8xf32>
    %54 = arith.maximumf %52, %53 : vector<20x8xf32>
    %c1_24 = arith.constant 1 : index
    %c0_25 = arith.constant 0 : index
    %c0_26 = arith.constant 0 : index
    %55 = vector.load %arg1[%c1_24, %c0_25, %c0_26] : memref<4x20x20xf32, #tpu.memory_space<vmem>>, vector<1x20x20xf32>
    %56 = vector.shape_cast %55 : vector<1x20x20xf32> to vector<20x20xf32>
    %cst_27 = arith.constant dense<0.000000e+00> : vector<20x8xf32>
    %57 = tpu.matmul %56, %54, %cst_27 {dimension_numbers = #tpu.dot_dimension_numbers<[1], [0], [0], [1], [0, 0, 1, 1], [], []>} : vector<20x20xf32>, vector<20x8xf32>, vector<20x8xf32> -> vector<20x8xf32>
    %c0_28 = arith.constant 0 : index
    %c4 = arith.constant 4 : index
    %58 = vector.load %arg2[%c0_28, %c4] : memref<20x9xf32, #tpu.memory_space<vmem>>, vector<20x1xf32>
    %c0_29 = arith.constant 0 : index
    %c5 = arith.constant 5 : index
    %59 = vector.load %arg2[%c0_29, %c5] : memref<20x9xf32, #tpu.memory_space<vmem>>, vector<20x1xf32>
    %cst_30 = arith.constant dense<0.000000e+00> : vector<20x1xf32>
    %60 = tpu.matmul %57, %0, %cst_30 {dimension_numbers = #tpu.dot_dimension_numbers<[1], [0], [0], [1], [0, 0, 1, 1], [], []>} : vector<20x8xf32>, vector<8x1xf32>, vector<20x1xf32> -> vector<20x1xf32>
    %cst_31 = arith.constant 1.250000e-01 : f32
    %61 = vector.broadcast %cst_31 : f32 to vector<20x1xf32>
    %62 = arith.mulf %60, %61 : vector<20x1xf32>
    %63 = arith.mulf %57, %57 : vector<20x8xf32>
    %cst_32 = arith.constant dense<0.000000e+00> : vector<20x1xf32>
    %64 = tpu.matmul %63, %0, %cst_32 {dimension_numbers = #tpu.dot_dimension_numbers<[1], [0], [0], [1], [0, 0, 1, 1], [], []>} : vector<20x8xf32>, vector<8x1xf32>, vector<20x1xf32> -> vector<20x1xf32>
    %cst_33 = arith.constant 1.250000e-01 : f32
    %65 = vector.broadcast %cst_33 : f32 to vector<20x1xf32>
    %66 = arith.mulf %64, %65 : vector<20x1xf32>
    %67 = arith.mulf %62, %62 : vector<20x1xf32>
    %68 = arith.subf %66, %67 : vector<20x1xf32>
    %cst_34 = arith.constant 0.000000e+00 : f32
    %69 = vector.broadcast %cst_34 : f32 to vector<20x1xf32>
    %70 = arith.maximumf %68, %69 : vector<20x1xf32>
    %cst_35 = arith.constant 9.99999974E-6 : f32
    %71 = vector.broadcast %cst_35 : f32 to vector<20x1xf32>
    %72 = arith.addf %70, %71 : vector<20x1xf32>
    %73 = math.rsqrt %72 : vector<20x1xf32>
    %74 = arith.mulf %58, %73 : vector<20x1xf32>
    %75 = arith.mulf %62, %74 : vector<20x1xf32>
    %76 = arith.subf %59, %75 : vector<20x1xf32>
    %77 = vector.broadcast %74 : vector<20x1xf32> to vector<20x8xf32>
    %78 = arith.mulf %57, %77 : vector<20x8xf32>
    %79 = vector.broadcast %76 : vector<20x1xf32> to vector<20x8xf32>
    %80 = arith.addf %78, %79 : vector<20x8xf32>
    %cst_36 = arith.constant 0.000000e+00 : f32
    %81 = vector.broadcast %cst_36 : f32 to vector<20x8xf32>
    %82 = arith.maximumf %80, %81 : vector<20x8xf32>
    %c2_37 = arith.constant 2 : index
    %c0_38 = arith.constant 0 : index
    %c0_39 = arith.constant 0 : index
    %83 = vector.load %arg1[%c2_37, %c0_38, %c0_39] : memref<4x20x20xf32, #tpu.memory_space<vmem>>, vector<1x20x20xf32>
    %84 = vector.shape_cast %83 : vector<1x20x20xf32> to vector<20x20xf32>
    %cst_40 = arith.constant dense<0.000000e+00> : vector<20x8xf32>
    %85 = tpu.matmul %84, %82, %cst_40 {dimension_numbers = #tpu.dot_dimension_numbers<[1], [0], [0], [1], [0, 0, 1, 1], [], []>} : vector<20x20xf32>, vector<20x8xf32>, vector<20x8xf32> -> vector<20x8xf32>
    %c0_41 = arith.constant 0 : index
    %c6 = arith.constant 6 : index
    %86 = vector.load %arg2[%c0_41, %c6] : memref<20x9xf32, #tpu.memory_space<vmem>>, vector<20x1xf32>
    %c0_42 = arith.constant 0 : index
    %c7 = arith.constant 7 : index
    %87 = vector.load %arg2[%c0_42, %c7] : memref<20x9xf32, #tpu.memory_space<vmem>>, vector<20x1xf32>
    %cst_43 = arith.constant dense<0.000000e+00> : vector<20x1xf32>
    %88 = tpu.matmul %85, %0, %cst_43 {dimension_numbers = #tpu.dot_dimension_numbers<[1], [0], [0], [1], [0, 0, 1, 1], [], []>} : vector<20x8xf32>, vector<8x1xf32>, vector<20x1xf32> -> vector<20x1xf32>
    %cst_44 = arith.constant 1.250000e-01 : f32
    %89 = vector.broadcast %cst_44 : f32 to vector<20x1xf32>
    %90 = arith.mulf %88, %89 : vector<20x1xf32>
    %91 = arith.mulf %85, %85 : vector<20x8xf32>
    %cst_45 = arith.constant dense<0.000000e+00> : vector<20x1xf32>
    %92 = tpu.matmul %91, %0, %cst_45 {dimension_numbers = #tpu.dot_dimension_numbers<[1], [0], [0], [1], [0, 0, 1, 1], [], []>} : vector<20x8xf32>, vector<8x1xf32>, vector<20x1xf32> -> vector<20x1xf32>
    %cst_46 = arith.constant 1.250000e-01 : f32
    %93 = vector.broadcast %cst_46 : f32 to vector<20x1xf32>
    %94 = arith.mulf %92, %93 : vector<20x1xf32>
    %95 = arith.mulf %90, %90 : vector<20x1xf32>
    %96 = arith.subf %94, %95 : vector<20x1xf32>
    %cst_47 = arith.constant 0.000000e+00 : f32
    %97 = vector.broadcast %cst_47 : f32 to vector<20x1xf32>
    %98 = arith.maximumf %96, %97 : vector<20x1xf32>
    %cst_48 = arith.constant 9.99999974E-6 : f32
    %99 = vector.broadcast %cst_48 : f32 to vector<20x1xf32>
    %100 = arith.addf %98, %99 : vector<20x1xf32>
    %101 = math.rsqrt %100 : vector<20x1xf32>
    %102 = arith.mulf %86, %101 : vector<20x1xf32>
    %103 = arith.mulf %90, %102 : vector<20x1xf32>
    %104 = arith.subf %87, %103 : vector<20x1xf32>
    %105 = vector.broadcast %102 : vector<20x1xf32> to vector<20x8xf32>
    %106 = arith.mulf %85, %105 : vector<20x8xf32>
    %107 = vector.broadcast %104 : vector<20x1xf32> to vector<20x8xf32>
    %108 = arith.addf %106, %107 : vector<20x8xf32>
    %cst_49 = arith.constant 0.000000e+00 : f32
    %109 = vector.broadcast %cst_49 : f32 to vector<20x8xf32>
    %110 = arith.maximumf %108, %109 : vector<20x8xf32>
    %c3_50 = arith.constant 3 : index
    %c0_51 = arith.constant 0 : index
    %c0_52 = arith.constant 0 : index
    %111 = vector.load %arg1[%c3_50, %c0_51, %c0_52] : memref<4x20x20xf32, #tpu.memory_space<vmem>>, vector<1x20x20xf32>
    %112 = vector.shape_cast %111 : vector<1x20x20xf32> to vector<20x20xf32>
    %cst_53 = arith.constant dense<0.000000e+00> : vector<20x8xf32>
    %113 = tpu.matmul %112, %110, %cst_53 {dimension_numbers = #tpu.dot_dimension_numbers<[1], [0], [0], [1], [0, 0, 1, 1], [], []>} : vector<20x20xf32>, vector<20x8xf32>, vector<20x8xf32> -> vector<20x8xf32>
    %c0_54 = arith.constant 0 : index
    %c8 = arith.constant 8 : index
    %114 = vector.load %arg2[%c0_54, %c8] : memref<20x9xf32, #tpu.memory_space<vmem>>, vector<20x1xf32>
    %115 = vector.broadcast %114 : vector<20x1xf32> to vector<20x8xf32>
    %116 = arith.addf %113, %115 : vector<20x8xf32>
    %117 = vector.extract_strided_slice %116 {offsets = [0, 0], sizes = [10, 8], strides = [1, 1]} : vector<20x8xf32> to vector<10x8xf32>
    %cst_55 = arith.constant dense<0xFF800000> : vector<8xf32>
    %118 = vector.multi_reduction <maximumf>, %117, %cst_55 [0] : vector<10x8xf32> to vector<8xf32>
    %119 = vector.shape_cast %118 : vector<8xf32> to vector<1x8xf32>
    %120 = vector.broadcast %119 : vector<1x8xf32> to vector<10x8xf32>
    %121 = arith.subf %117, %120 : vector<10x8xf32>
    %122 = math.exp %121 : vector<10x8xf32>
    %cst_56 = arith.constant 1.000000e+00 : f32
    %123 = vector.broadcast %cst_56 : f32 to vector<1x10xf32>
    %cst_57 = arith.constant dense<0.000000e+00> : vector<1x8xf32>
    %124 = tpu.matmul %123, %122, %cst_57 {dimension_numbers = #tpu.dot_dimension_numbers<[1], [0], [0], [1], [0, 0, 1, 1], [], []>} : vector<1x10xf32>, vector<10x8xf32>, vector<1x8xf32> -> vector<1x8xf32>
    %125 = math.log %124 : vector<1x8xf32>
    %126 = arith.addf %119, %125 : vector<1x8xf32>
    %127 = vector.broadcast %126 : vector<1x8xf32> to vector<10x8xf32>
    %128 = arith.subf %117, %127 : vector<10x8xf32>
    %c0_58 = arith.constant 0 : index
    %c0_59 = arith.constant 0 : index
    %129 = vector.load %arg3[%c0_58, %c0_59] : memref<10x8xf32, #tpu.memory_space<vmem>>, vector<10x8xf32>
    tpu.vector_store %arg3[%c0_58, %c0_59], %128 {strides = array<i32>} : memref<10x8xf32, #tpu.memory_space<vmem>>, vector<10x8xf32>,
    return
  }
}

</mosaic_0001>

<bundles_post_ra>
// kernel: top_model_forward.1
= control target key start
LH: loop header
LB: loop body
LE: loop exit
PB: predicated region body
PF: predicated region fallthrough
CT: control target
= control target key end

     0   :  { %vm20_vm0 = vcmask 64512   ;;  %v1988_v0 = vmov 0.0   ;;  %vm1989_vm1 = vmmov 0   ;;  %v1990_v2 = vmov 1.0   ;;  %s1992_s21 = smov 1   ;;  %s1995_s29 = smov 2   ;;  %s2340_s0 = inlined_call_operand.vmem [shape: f32[20,8], index: 0, kind: input, shape index: {}]   ;;  %s2341_s2 = inlined_call_operand.vmem [shape: f32[20,9], index: 2, kind: input, shape index: {}]   ;;  %s2342_s1 = inlined_call_operand.vmem [shape: f32[4,20,20], index: 1, kind: input, shape index: {}]   ;;  %s2343_s3 = inlined_call_operand.vmem [shape: f32[10,8], index: 3, kind: output, shape index: {}]  }
   0x1   :  { %1749 = vmatprep.subr.mxu0 %v1988_v0  ;;  %1751 = vmatprep.mubr.msk.f32.mxu0 %vm1989_vm1, %v1988_v0  ;;  %v2038_v1 = vld [vmem:[%s2340_s0] sm:$0xff]  ;;  %v2047_v4 = vld [vmem:[%s2340_s0 + $0x8] sm:$0xff]  ;;  %v2065_v6 = vld [vmem:[%s2340_s0 + $0x10] sm:$0xf]  ;;  %v1991_v8 = vmov 0   ;;  %v1993_v51 = vmov 1  }
   0x2   :  { %1750 = vmatpush3.msra.mxu0 %v1990_v2  ;;  %1760 = vmatprep.subr.mxu1 %v1988_v0  ;;  %v113_v3 = vmul.f32 %v2038_v1, %v2038_v1  ;;  %v114_v5 = vmul.f32 %v2047_v4, %v2047_v4  ;;  %v115_v7 = vmul.f32 %v2065_v6, %v2065_v6  ;;  %v2087_v39 = vld [vmem:[%s2341_s2] sm:$0xff]  ;;  %v2093_v42 = vld [vmem:[%s2341_s2 + $0x8] sm:$0xff]  ;;  %v2099_v46 = vld [vmem:[%s2341_s2 + $0x10] sm:$0xf]  ;;  %v1994_v58 = vmov 0.0|0.0   ;;  %s1997_s30 = smov 126  }
   0x3   :  { %1752 = vmatmul.mubr.msk.f32.vlgmr.msra.gmra.mrb[0].mxu0 %vm20_vm0, %v2038_v1  ;;  %1761 = vmatpush3.msra.mxu1 %v1990_v2  ;;  %vm296_vm2 = vcmask 1043456   ;;  %vm286_vm3 = vcmask 162816   ;;  %s1998_s4 = smov 3   ;;  %s2000_s11 = smov 4   ;;  %vm1531_vm4 = vcmask 58368   ;;  %vm1550_vm5 = vcmask 1041408  }
   0x4   :  { %1762 = vmatprep.mubr.msk.f32.mxu1 %vm1989_vm1, %v1988_v0  ;;  %1754 = vmatprep.mubr.msk.f32.mxu0 %vm1989_vm1, %v1988_v0  ;;  %s2002_s12 = smov 124   ;;  %s2003_s13 = smov 5   ;;  %vm2011_vm6 = vmmov 1   ;;  %vm1546_vm8 = vcmask 80896  }
   0x5   :  { %1763 = vmatmul.mubr.msk.f32.vlgmr.msra.gmra.mrb[0].mxu1 %vm20_vm0, %v113_v3  ;;  %1786 = vmatprep.subr.mxu1 %v1988_v0  ;;  %s2005_s19 = smov 6   ;;  %s2007_s20 = smov 122   ;;  %vm1918_vm7 = vmpackc.low %vm1550_vm5, %vm2011_vm6 }
   0x6   :  { %1765 = vmatprep.mubr.msk.f32.mxu1 %vm1989_vm1, %v1988_v0  ;;  %1787 = vmatpush3.msra.mxu1 %v1990_v2 }
   0x7   :  { %1755 = vmatmul.mubr.msk.f32.gmra.mrb[2].mxu0 %vm20_vm0, %v2047_v4  ;;  %1945 = vset.pattern.permute.xlu0 %v1991_v8 }
   0x8   :  { %1757 = vmatprep.mubr.msk.f32.mxu0 %vm1989_vm1, %v1988_v0  ;;  %1944 = vset.pattern.permute.xlu1 %v1991_v8 }
   0x9   :  { %1766 = vmatmul.mubr.msk.f32.gmra.mrb[2].mxu1 %vm20_vm0, %v114_v5  ;;  %1904 = vmatprep.subr.bf16.mxu0 %v1994_v58 }
   0xa   :  { %1768 = vmatprep.mubr.msk.f32.mxu1 %vm1989_vm1, %v1988_v0  ;;  %1907 = vmatprep.subr.bf16.mxu1 %v1994_v58 }
   0xb   :  { %1758 = vmatmul.mubr.msk.f32.gmra.mrb[4].mxu0 %vm20_vm0, %v2065_v6 }
   0xc   :  { %1777 = vmatprep.mubr.msk.f32.mxu0 %vm1989_vm1, %v1988_v0 }
   0xd   :  { %1769 = vmatmul.mubr.msk.f32.gmra.mrb[4].mxu1 %vm20_vm0, %v115_v7 }
   0xe   :  { %1788 = vmatprep.mubr.msk.f32.mxu1 %vm1989_vm1, %v1988_v0 }
  0xd6   :  { %v96_v9 = vpop.f32.mrb[0].mxu0 }
  0xd7   :  { %v110_v10 = vmul.f32 0.125, %v96_v9  ;;  %v1753_v11 = vpop.f32.mrb[1].mxu0 }
  0xd8   :  { %v191_v12 = vpop.f32.mrb[0].mxu1 }
  0xd9   :  { %v208_v13 = vmul.f32 %v110_v10, %v110_v10  ;;  %v205_v14 = vmul.f32 0.125, %v191_v12  ;;  %v1764_v15 = vpop.f32.mrb[1].mxu1 }
  0xda   :  { %v101_v16 = vpop.f32.mrb[2].mxu0 }
  0xdb   :  { %v211_v17 = vsub.f32 %v205_v14, %v208_v13  ;;  %v111_v18 = vmul.f32 0.125, %v101_v16  ;;  %v1756_v19 = vpop.f32.mrb[3].mxu0 }
  0xdc   :  { %v196_v20 = vpop.f32.mrb[2].mxu1 }
  0xdd   :  { %v214_v21 = vmax.f32 %v211_v17, 0.0  ;;  %v209_v22 = vmul.f32 %v111_v18, %v111_v18  ;;  %v206_v23 = vmul.f32 0.125, %v196_v20  ;;  %v1767_v24 = vpop.f32.mrb[3].mxu1 }
  0xde   :  { %v106_v25 = vpop.f32.mrb[4].mxu0 }
  0xdf   :  { %v217_v26 = vadd.f32 1e-05, %v214_v21  ;;  %v212_v27 = vsub.f32 %v206_v23, %v209_v22  ;;  %v112_v28 = vmul.f32 0.125, %v106_v25  ;;  %v1759_v29 = vpop.f32.mrb[5].mxu0 }
  0xe0   :  { %v201_v30 = vpop.f32.mrb[4].mxu1 }
  0xe1   :  { %1958 = vrsqrt.f32 %v217_v26  ;;  %v215_v31 = vmax.f32 %v212_v27, 0.0  ;;  %v210_v32 = vmul.f32 %v112_v28, %v112_v28  ;;  %v207_v33 = vmul.f32 0.125, %v201_v30  ;;  %v1770_v34 = vpop.f32.mrb[5].mxu1 }
  0xe3   :  { %v218_v35 = vadd.f32 1e-05, %v215_v31  ;;  %v213_v36 = vsub.f32 %v207_v33, %v210_v32 }
  0xe5   :  { %1960 = vrsqrt.f32 %v218_v35  ;;  %v216_v37 = vmax.f32 %v213_v36, 0.0 }
  0xe7   :  { %v219_v38 = vadd.f32 1e-05, %v216_v37 }
  0xe9   :  { %1962 = vrsqrt.f32 %v219_v38 }
  0xeb   :  { %v1959_v40 = vpop.eup %1958 }
  0xec   :  { %v223_v41 = vmul.f32 %v1959_v40, %v2087_v39 }
  0xee   :  { %v226_v43 = vmul.f32 %v223_v41, %v110_v10 }
  0xef   :  { %v1961_v44 = vpop.eup %1960 }
  0xf0   :  { %232 = vrot.lane.b32.xlu0 %v226_v43, %s1992_s21  ;;  %v224_v45 = vmul.f32 %v1961_v44, %v2093_v42 }
  0xf2   :  { %v227_v47 = vmul.f32 %v224_v45, %v111_v18 }
  0xf3   :  { %v1963_v48 = vpop.eup %1962 }
  0xf4   :  { %234 = vrot.lane.b32.xlu0 %v227_v47, %s1992_s21  ;;  %v225_v49 = vmul.f32 %v1963_v48, %v2099_v46 }
  0xf6   :  { %v228_v50 = vmul.f32 %v225_v49, %v112_v28 }
  0xf8   :  { %251 = vperm.xlu0 %1945, %v224_v45   ;;  %236 = vrot.lane.b32.xlu1 %v228_v50, %s1992_s21  ;;  %s2008_s21 = smov 7  }
  0xfc   :  { %256 = vperm.xlu0 %1945, %v225_v49   ;;  %246 = vperm.xlu1 %1944, %v223_v41  }
 0x100   :  { %1946 = vset.pattern.permute.xlu1 %v1993_v51 }
 0x162   :  { %v233_v52 = vpop.permute.xlu0 %232 }
 0x163   :  { %v241_v53 = vsub.f32 %v2087_v39, %v233_v52 }
 0x165   :  { %264 = vperm.xlu1 %1946, %v241_v53  }
 0x166   :  { %v235_v54 = vpop.permute.xlu0 %234 }
 0x167   :  { %v242_v55 = vsub.f32 %v2093_v42, %v235_v54 }
 0x169   :  { %269 = vperm.xlu1 %1946, %v242_v55  }
 0x16a   :  { %v237_v56 = vpop.permute.xlu1 %236 }
 0x16b   :  { %v243_v57 = vsub.f32 %v2099_v46, %v237_v56 }
 0x16d   :  { %274 = vperm.xlu1 %1946, %v243_v57  }
 0x177   :  { %v252_v60 = vpop.permute.xlu0 %251 }
 0x178   :  { %v260_v63 = vmul.f32 %v252_v60, %v2047_v4  ;;  %v284_v4 = vld [vmem:[%s2342_s1 + $0x8] sm:$0xff] }
 0x17b   :  { %v247_v59 = vpop.permute.xlu1 %246  ;;  %v257_v5 = vpop.permute.xlu0 %256 }
 0x17c   :  { %v259_v62 = vmul.f32 %v247_v59, %v2038_v1  ;;  %v261_v9 = vmul.f32 %v257_v5, %v2065_v6  ;;  %v283_v1 = vld [vmem:[%s2342_s1] sm:$0xff]  ;;  %v285_v6 = vld [vmem:[%s2342_s1 + $0x10] sm:$0xf] }
 0x1e4   :  { %v265_v61 = vpop.permute.xlu1 %264 }
 0x1e5   :  { %v277_v3 = vadd.f32 %v265_v61, %v259_v62  ;;  %v1996_v62 = vmov 2  }
 0x1e6   :  { %1947 = vset.pattern.permute.xlu1 %v1996_v62  ;;  %1948 = vset.pattern.permute.xlu0 %v1996_v62 }
 0x1e7   :  { %v280_v10 = vmax.f32 %v277_v3, 0.0 }
 0x1e8   :  { %v270_v7 = vpop.permute.xlu1 %269 }
 0x1e9   :  { %v278_v8 = vadd.f32 %v270_v7, %v260_v63 }
 0x1eb   :  { %v281_v11 = vmax.f32 %v278_v8, 0.0 }
 0x1ec   :  { %v275_v12 = vpop.permute.xlu1 %274 }
 0x1ed   :  { %v1905_v13 = vpack.c.bf16 %v281_v11, %v280_v10  ;;  %v279_v14 = vadd.f32 %v275_v12, %v261_v9 }
 0x1ef   :  { %1906 = vmatpush3.bf16.msra.mxu0 %v1905_v13  ;;  %v282_v15 = vmax.f32 %v279_v14, 0.0 }
 0x1f0   :  { %1775 = vmatprep.subr.mxu0 %v1988_v0 }
 0x1f3   :  { %1776 = vmatpush3.msk.msra.mxu0 %vm296_vm2, %v282_v15 }
 0x1f4   :  { %1778 = vmatmul.mubr.msk.f32.vlgmr.msra.gmra.mrb[6].mxu0 %vm286_vm3, %v283_v1  ;;  %1797 = vmatprep.subr.mxu0 %v1988_v0  ;;  %v1999_v1 = vmov 3  }
 0x1f5   :  { %1780 = vmatprep.mubr.msk.f32.mxu0 %vm1989_vm1, %v1988_v0  ;;  %1798 = vmatpush3.msra.mxu0 %v1990_v2 }
 0x1f6   :  { %1823 = vmatprep.subr.mxu0 %v1988_v0 }
 0x1f8   :  { %1781 = vmatmul.mubr.msk.f32.gmra.mrb[8].mxu0 %vm286_vm3, %v284_v4 }
 0x1f9   :  { %1783 = vmatprep.mubr.msk.f32.mxu0 %vm1989_vm1, %v1988_v0 }
 0x1fc   :  { %1784 = vmatmul.mubr.msk.f32.gmra.mrb[10].mxu0 %vm286_vm3, %v285_v6 }
 0x1fd   :  { %1799 = vmatprep.mubr.msk.f32.mxu0 %vm1989_vm1, %v1988_v0 }
 0x2c7   :  { %v2133_v16 = vpop.f32.mrb[6].mxu0 }
 0x2c8   :  { %v472_v17 = vmul.f32 %v2133_v16, %v2133_v16  ;;  %v1779_v18 = vpop.f32.mrb[7].mxu0  ;;  %1789 = vmatmul.mubr.msk.f32.vlgmr.msra.gmra.mrb[6].mxu1 %vm20_vm0, %v2133_v16 }
 0x2c9   :  { %1791 = vmatprep.mubr.msk.f32.mxu1 %vm1989_vm1, %v1988_v0 }
 0x2ca   :  { %1800 = vmatmul.mubr.msk.f32.vlgmr.msra.gmra.mrb[12].mxu0 %vm20_vm0, %v472_v17 }
 0x2cb   :  { %v2142_v19 = vpop.f32.mrb[8].mxu0  ;;  %1802 = vmatprep.mubr.msk.f32.mxu0 %vm1989_vm1, %v1988_v0  ;;  %1824 = vmatpush3.msra.mxu0 %v1990_v2 }
 0x2cc   :  { %v473_v20 = vmul.f32 %v2142_v19, %v2142_v19  ;;  %v1782_v21 = vpop.f32.mrb[9].mxu0  ;;  %1792 = vmatmul.mubr.msk.f32.gmra.mrb[8].mxu1 %vm20_vm0, %v2142_v19  ;;  %1910 = vmatprep.subr.bf16.mxu0 %v1994_v58 }
 0x2cd   :  { %1794 = vmatprep.mubr.msk.f32.mxu1 %vm1989_vm1, %v1988_v0 }
 0x2ce   :  { %1803 = vmatmul.mubr.msk.f32.gmra.mrb[14].mxu0 %vm20_vm0, %v473_v20 }
 0x2cf   :  { %v2155_v22 = vpop.f32.mrb[10].mxu0  ;;  %1805 = vmatprep.mubr.msk.f32.mxu0 %vm1989_vm1, %v1988_v0 }
 0x2d0   :  { %v474_v23 = vmul.f32 %v2155_v22, %v2155_v22  ;;  %1795 = vmatmul.mubr.msk.f32.gmra.mrb[10].mxu1 %vm20_vm0, %v2155_v22  ;;  %v1785_v24 = vpop.f32.mrb[11].mxu0 }
 0x2d1   :  { %1814 = vmatprep.mubr.msk.f32.mxu1 %vm1989_vm1, %v1988_v0 }
 0x2d2   :  { %1806 = vmatmul.mubr.msk.f32.gmra.mrb[16].mxu0 %vm20_vm0, %v474_v23 }
 0x2d3   :  { %1825 = vmatprep.mubr.msk.f32.mxu0 %vm1989_vm1, %v1988_v0 }
 0x39b   :  { %v455_v25 = vpop.f32.mrb[6].mxu1 }
 0x39c   :  { %v469_v26 = vmul.f32 0.125, %v455_v25  ;;  %v1790_v27 = vpop.f32.mrb[7].mxu1 }
 0x39d   :  { %v550_v28 = vpop.f32.mrb[12].mxu0 }
 0x39e   :  { %v567_v29 = vmul.f32 %v469_v26, %v469_v26  ;;  %v564_v30 = vmul.f32 0.125, %v550_v28  ;;  %v1801_v31 = vpop.f32.mrb[13].mxu0 }
 0x39f   :  { %v460_v32 = vpop.f32.mrb[8].mxu1 }
 0x3a0   :  { %v570_v33 = vsub.f32 %v564_v30, %v567_v29  ;;  %v470_v34 = vmul.f32 0.125, %v460_v32  ;;  %v1793_v35 = vpop.f32.mrb[9].mxu1 }
 0x3a1   :  { %v555_v36 = vpop.f32.mrb[14].mxu0 }
 0x3a2   :  { %v573_v37 = vmax.f32 %v570_v33, 0.0  ;;  %v568_v38 = vmul.f32 %v470_v34, %v470_v34  ;;  %v565_v40 = vmul.f32 0.125, %v555_v36  ;;  %v1804_v41 = vpop.f32.mrb[15].mxu0 }
 0x3a3   :  { %v465_v43 = vpop.f32.mrb[10].mxu1 }
 0x3a4   :  { %v576_v44 = vadd.f32 1e-05, %v573_v37  ;;  %v571_v45 = vsub.f32 %v565_v40, %v568_v38  ;;  %v471_v47 = vmul.f32 0.125, %v465_v43  ;;  %v1796_v48 = vpop.f32.mrb[11].mxu1 }
 0x3a5   :  { %v560_v49 = vpop.f32.mrb[16].mxu0 }
 0x3a6   :  { %1964 = vrsqrt.f32 %v576_v44  ;;  %v574_v50 = vmax.f32 %v571_v45, 0.0  ;;  %v569_v51 = vmul.f32 %v471_v47, %v471_v47  ;;  %v566_v52 = vmul.f32 0.125, %v560_v49  ;;  %v1807_v53 = vpop.f32.mrb[17].mxu0 }
 0x3a8   :  { %v577_v54 = vadd.f32 1e-05, %v574_v50  ;;  %v572_v55 = vsub.f32 %v566_v52, %v569_v51 }
 0x3aa   :  { %1966 = vrsqrt.f32 %v577_v54  ;;  %v575_v56 = vmax.f32 %v572_v55, 0.0 }
 0x3ac   :  { %v578_v57 = vadd.f32 1e-05, %v575_v56 }
 0x3ae   :  { %1968 = vrsqrt.f32 %v578_v57 }
 0x3b0   :  { %v1965_v59 = vpop.eup %1964 }
 0x3b1   :  { %585 = vrot.lane.b32.xlu0 %v1965_v59, %s1995_s29 }
 0x3b4   :  { %v1967_v60 = vpop.eup %1966 }
 0x3b5   :  { %587 = vrot.lane.b32.xlu1 %v1967_v60, %s1995_s29 }
 0x3b8   :  { %v1969_v61 = vpop.eup %1968 }
 0x3b9   :  { %589 = vrot.lane.b32.xlu0 %v1969_v61, %s1995_s29 }
 0x423   :  { %v586_v63 = vpop.permute.xlu0 %585 }
 0x424   :  { %v594_v3 = vmul.f32 %v586_v63, %v2087_v39 }
 0x426   :  { %600 = vrot.lane.b32.xlu1 %v594_v3, %s1997_s30 }
 0x427   :  { %v588_v5 = vpop.permute.xlu1 %587 }
 0x428   :  { %v595_v7 = vmul.f32 %v588_v5, %v2093_v42 }
 0x42a   :  { %602 = vrot.lane.b32.xlu0 %v595_v7, %s1997_s30 }
 0x42b   :  { %v590_v8 = vpop.permute.xlu0 %589 }
 0x42c   :  { %v596_v9 = vmul.f32 %v590_v8, %v2099_v46 }
 0x42e   :  { %604 = vrot.lane.b32.xlu1 %v596_v9, %s1997_s30 }
 0x498   :  { %v601_v10 = vpop.permute.xlu1 %600 }
 0x499   :  { %v609_v11 = vmul.f32 %v601_v10, %v469_v26 }
 0x49b   :  { %615 = vrot.lane.b32.xlu0 %v609_v11, %s1998_s4 }
 0x49c   :  { %v603_v12 = vpop.permute.xlu0 %602 }
 0x49d   :  { %v610_v13 = vmul.f32 %v603_v12, %v470_v34 }
 0x49f   :  { %617 = vrot.lane.b32.xlu1 %v610_v13, %s1998_s4 }
 0x4a0   :  { %v605_v14 = vpop.permute.xlu1 %604 }
 0x4a1   :  { %v611_v15 = vmul.f32 %v605_v14, %v471_v47 }
 0x4a3   :  { %619 = vrot.lane.b32.xlu0 %v611_v15, %s1998_s4  ;;  %628 = vperm.xlu1 %1947, %v594_v3  }
 0x4a7   :  { %632 = vperm.xlu0 %1948, %v595_v7   ;;  %1949 = vset.pattern.permute.xlu1 %v1999_v1 }
 0x4ab   :  { %636 = vperm.xlu0 %1948, %v596_v9  }
 0x50d   :  { %v616_v4 = vpop.permute.xlu0 %615 }
 0x50e   :  { %v624_v6 = vsub.f32 %v2087_v39, %v616_v4 }
 0x510   :  { %644 = vperm.xlu1 %1949, %v624_v6  }
 0x511   :  { %v618_v17 = vpop.permute.xlu1 %617 }
 0x512   :  { %v625_v18 = vsub.f32 %v2093_v42, %v618_v17 }
 0x514   :  { %649 = vperm.xlu1 %1949, %v625_v18  }
 0x515   :  { %v620_v20 = vpop.permute.xlu0 %619 }
 0x516   :  { %v626_v21 = vsub.f32 %v2099_v46, %v620_v20 }
 0x518   :  { %654 = vperm.xlu1 %1949, %v626_v21  }
 0x522   :  { %v629_v23 = vpop.permute.xlu1 %628 }
 0x523   :  { %v639_v26 = vmul.f32 %v629_v23, %v2133_v16  ;;  %v1655_v16 = vld [vmem:[%s2342_s1 + $0x18] sm:$0xff] }
 0x526   :  { %v633_v24 = vpop.permute.xlu0 %632 }
 0x527   :  { %v640_v27 = vmul.f32 %v633_v24, %v2142_v19  ;;  %v1656_v19 = vld [vmem:[%s2342_s1 + $0x20] sm:$0xff] }
 0x52a   :  { %v637_v29 = vpop.permute.xlu0 %636 }
 0x52b   :  { %v641_v32 = vmul.f32 %v637_v29, %v2155_v22  ;;  %v1657_v22 = vld [vmem:[%s2342_s1 + $0x28] sm:$0xf] }
 0x58f   :  { %v645_v25 = vpop.permute.xlu1 %644 }
 0x590   :  { %v657_v28 = vadd.f32 %v645_v25, %v639_v26  ;;  %v2001_v26 = vmov 4  }
 0x591   :  { %1950 = vset.pattern.permute.xlu1 %v2001_v26  ;;  %1951 = vset.pattern.permute.xlu0 %v2001_v26 }
 0x592   :  { %v660_v33 = vmax.f32 %v657_v28, 0.0 }
 0x593   :  { %v650_v30 = vpop.permute.xlu1 %649 }
 0x594   :  { %v658_v31 = vadd.f32 %v650_v30, %v640_v27 }
 0x596   :  { %v661_v34 = vmax.f32 %v658_v31, 0.0 }
 0x597   :  { %v655_v35 = vpop.permute.xlu1 %654 }
 0x598   :  { %v1908_v36 = vpack.c.bf16 %v661_v34, %v660_v33  ;;  %v659_v37 = vadd.f32 %v655_v35, %v641_v32 }
 0x59a   :  { %1909 = vmatpush3.bf16.msra.mxu1 %v1908_v36  ;;  %v662_v38 = vmax.f32 %v659_v37, 0.0 }
 0x59b   :  { %1812 = vmatprep.subr.mxu1 %v1988_v0 }
 0x59e   :  { %1813 = vmatpush3.msk.msra.mxu1 %vm296_vm2, %v662_v38 }
 0x59f   :  { %1815 = vmatmul.mubr.msk.f32.vlgmr.msra.gmra.mrb[12].mxu1 %vm286_vm3, %v1655_v16  ;;  %1834 = vmatprep.subr.mxu1 %v1988_v0  ;;  %v2004_v16 = vmov 5  }
 0x5a0   :  { %1817 = vmatprep.mubr.msk.f32.mxu1 %vm1989_vm1, %v1988_v0  ;;  %1835 = vmatpush3.msra.mxu1 %v1990_v2 }
 0x5a1   :  { %1860 = vmatprep.subr.mxu1 %v1988_v0 }
 0x5a3   :  { %1818 = vmatmul.mubr.msk.f32.gmra.mrb[14].mxu1 %vm286_vm3, %v1656_v19 }
 0x5a4   :  { %1820 = vmatprep.mubr.msk.f32.mxu1 %vm1989_vm1, %v1988_v0 }
 0x5a7   :  { %1821 = vmatmul.mubr.msk.f32.gmra.mrb[16].mxu1 %vm286_vm3, %v1657_v22 }
 0x5a8   :  { %1836 = vmatprep.mubr.msk.f32.mxu1 %vm1989_vm1, %v1988_v0 }
 0x672   :  { %v2200_v40 = vpop.f32.mrb[12].mxu1 }
 0x673   :  { %v851_v41 = vmul.f32 %v2200_v40, %v2200_v40  ;;  %v1816_v43 = vpop.f32.mrb[13].mxu1  ;;  %1826 = vmatmul.mubr.msk.f32.vlgmr.msra.gmra.mrb[18].mxu0 %vm20_vm0, %v2200_v40 }
 0x674   :  { %1828 = vmatprep.mubr.msk.f32.mxu0 %vm1989_vm1, %v1988_v0 }
 0x675   :  { %1837 = vmatmul.mubr.msk.f32.vlgmr.msra.gmra.mrb[18].mxu1 %vm20_vm0, %v851_v41 }
 0x676   :  { %v2209_v44 = vpop.f32.mrb[14].mxu1  ;;  %1839 = vmatprep.mubr.msk.f32.mxu1 %vm1989_vm1, %v1988_v0  ;;  %1861 = vmatpush3.msra.mxu1 %v1990_v2 }
 0x677   :  { %v852_v45 = vmul.f32 %v2209_v44, %v2209_v44  ;;  %v1819_v47 = vpop.f32.mrb[15].mxu1  ;;  %1829 = vmatmul.mubr.msk.f32.gmra.mrb[20].mxu0 %vm20_vm0, %v2209_v44  ;;  %1913 = vmatprep.subr.bf16.mxu1 %v1994_v58 }
 0x678   :  { %1831 = vmatprep.mubr.msk.f32.mxu0 %vm1989_vm1, %v1988_v0 }
 0x679   :  { %1840 = vmatmul.mubr.msk.f32.gmra.mrb[20].mxu1 %vm20_vm0, %v852_v45 }
 0x67a   :  { %v2222_v48 = vpop.f32.mrb[16].mxu1  ;;  %1842 = vmatprep.mubr.msk.f32.mxu1 %vm1989_vm1, %v1988_v0 }
 0x67b   :  { %v853_v49 = vmul.f32 %v2222_v48, %v2222_v48  ;;  %1832 = vmatmul.mubr.msk.f32.gmra.mrb[22].mxu0 %vm20_vm0, %v2222_v48  ;;  %v1822_v50 = vpop.f32.mrb[17].mxu1 }
 0x67c   :  { %1851 = vmatprep.mubr.msk.f32.mxu0 %vm1989_vm1, %v1988_v0 }
 0x67d   :  { %1843 = vmatmul.mubr.msk.f32.gmra.mrb[22].mxu1 %vm20_vm0, %v853_v49 }
 0x67e   :  { %1862 = vmatprep.mubr.msk.f32.mxu1 %vm1989_vm1, %v1988_v0 }
 0x746   :  { %v834_v51 = vpop.f32.mrb[18].mxu0 }
 0x747   :  { %v848_v52 = vmul.f32 0.125, %v834_v51  ;;  %v1827_v53 = vpop.f32.mrb[19].mxu0 }
 0x748   :  { %v929_v54 = vpop.f32.mrb[18].mxu1 }
 0x749   :  { %v946_v55 = vmul.f32 %v848_v52, %v848_v52  ;;  %v943_v56 = vmul.f32 0.125, %v929_v54  ;;  %v1838_v57 = vpop.f32.mrb[19].mxu1 }
 0x74a   :  { %v839_v59 = vpop.f32.mrb[20].mxu0 }
 0x74b   :  { %v949_v60 = vsub.f32 %v943_v56, %v946_v55  ;;  %v849_v61 = vmul.f32 0.125, %v839_v59  ;;  %v1830_v62 = vpop.f32.mrb[21].mxu0 }
 0x74c   :  { %v934_v63 = vpop.f32.mrb[20].mxu1 }
 0x74d   :  { %v952_v3 = vmax.f32 %v949_v60, 0.0  ;;  %v947_v5 = vmul.f32 %v849_v61, %v849_v61  ;;  %v944_v7 = vmul.f32 0.125, %v934_v63  ;;  %v1841_v8 = vpop.f32.mrb[21].mxu1 }
 0x74e   :  { %v844_v9 = vpop.f32.mrb[22].mxu0 }
 0x74f   :  { %v955_v10 = vadd.f32 1e-05, %v952_v3  ;;  %v950_v11 = vsub.f32 %v944_v7, %v947_v5  ;;  %v850_v12 = vmul.f32 0.125, %v844_v9  ;;  %v1833_v13 = vpop.f32.mrb[23].mxu0 }
 0x750   :  { %v939_v14 = vpop.f32.mrb[22].mxu1 }
 0x751   :  { %1970 = vrsqrt.f32 %v955_v10  ;;  %v953_v15 = vmax.f32 %v950_v11, 0.0  ;;  %v948_v1 = vmul.f32 %v850_v12, %v850_v12  ;;  %v945_v4 = vmul.f32 0.125, %v939_v14  ;;  %v1844_v6 = vpop.f32.mrb[23].mxu1 }
 0x753   :  { %v956_v17 = vadd.f32 1e-05, %v953_v15  ;;  %v951_v18 = vsub.f32 %v945_v4, %v948_v1 }
 0x755   :  { %1972 = vrsqrt.f32 %v956_v17  ;;  %v954_v20 = vmax.f32 %v951_v18, 0.0 }
 0x757   :  { %v957_v21 = vadd.f32 1e-05, %v954_v20 }
 0x759   :  { %1974 = vrsqrt.f32 %v957_v21 }
 0x75b   :  { %v1971_v23 = vpop.eup %1970 }
 0x75c   :  { %964 = vrot.lane.b32.xlu0 %v1971_v23, %s2000_s11 }
 0x75f   :  { %v1973_v24 = vpop.eup %1972 }
 0x760   :  { %966 = vrot.lane.b32.xlu1 %v1973_v24, %s2000_s11 }
 0x763   :  { %v1975_v25 = vpop.eup %1974 }
 0x764   :  { %968 = vrot.lane.b32.xlu0 %v1975_v25, %s2000_s11 }
 0x7ce   :  { %v965_v27 = vpop.permute.xlu0 %964 }
 0x7cf   :  { %v973_v28 = vmul.f32 %v965_v27, %v2087_v39 }
 0x7d1   :  { %979 = vrot.lane.b32.xlu1 %v973_v28, %s2002_s12 }
 0x7d2   :  { %v967_v29 = vpop.permute.xlu1 %966 }
 0x7d3   :  { %v974_v30 = vmul.f32 %v967_v29, %v2093_v42 }
 0x7d5   :  { %981 = vrot.lane.b32.xlu0 %v974_v30, %s2002_s12 }
 0x7d6   :  { %v969_v31 = vpop.permute.xlu0 %968 }
 0x7d7   :  { %v975_v32 = vmul.f32 %v969_v31, %v2099_v46 }
 0x7d9   :  { %983 = vrot.lane.b32.xlu1 %v975_v32, %s2002_s12 }
 0x843   :  { %v980_v33 = vpop.permute.xlu1 %979 }
 0x844   :  { %v988_v34 = vmul.f32 %v980_v33, %v848_v52 }
 0x846   :  { %994 = vrot.lane.b32.xlu0 %v988_v34, %s2003_s13 }
 0x847   :  { %v982_v35 = vpop.permute.xlu0 %981 }
 0x848   :  { %v989_v36 = vmul.f32 %v982_v35, %v849_v61 }
 0x84a   :  { %996 = vrot.lane.b32.xlu1 %v989_v36, %s2003_s13 }
 0x84b   :  { %v984_v37 = vpop.permute.xlu1 %983 }
 0x84c   :  { %v990_v38 = vmul.f32 %v984_v37, %v850_v12 }
 0x84e   :  { %998 = vrot.lane.b32.xlu0 %v990_v38, %s2003_s13  ;;  %1007 = vperm.xlu1 %1950, %v973_v28  }
 0x852   :  { %1011 = vperm.xlu0 %1951, %v974_v30   ;;  %1952 = vset.pattern.permute.xlu1 %v2004_v16 }
 0x856   :  { %1015 = vperm.xlu0 %1951, %v975_v32  }
 0x8b8   :  { %v995_v19 = vpop.permute.xlu0 %994 }
 0x8b9   :  { %v1003_v22 = vsub.f32 %v2087_v39, %v995_v19 }
 0x8bb   :  { %1023 = vperm.xlu1 %1952, %v1003_v22  }
 0x8bc   :  { %v997_v41 = vpop.permute.xlu1 %996 }
 0x8bd   :  { %v1004_v43 = vsub.f32 %v2093_v42, %v997_v41 }
 0x8bf   :  { %1028 = vperm.xlu1 %1952, %v1004_v43  }
 0x8c0   :  { %v999_v45 = vpop.permute.xlu0 %998 }
 0x8c1   :  { %v1005_v47 = vsub.f32 %v2099_v46, %v999_v45 }
 0x8c3   :  { %1033 = vperm.xlu1 %1952, %v1005_v47  }
 0x8cd   :  { %v1008_v49 = vpop.permute.xlu1 %1007 }
 0x8ce   :  { %v1018_v52 = vmul.f32 %v1008_v49, %v2200_v40  ;;  %v1668_v40 = vld [vmem:[%s2342_s1 + $0x30] sm:$0xff] }
 0x8d1   :  { %v1012_v50 = vpop.permute.xlu0 %1011 }
 0x8d2   :  { %v1019_v53 = vmul.f32 %v1012_v50, %v2209_v44  ;;  %v1669_v44 = vld [vmem:[%s2342_s1 + $0x38] sm:$0xff] }
 0x8d5   :  { %v1016_v55 = vpop.permute.xlu0 %1015 }
 0x8d6   :  { %v1020_v59 = vmul.f32 %v1016_v55, %v2222_v48  ;;  %v1670_v48 = vld [vmem:[%s2342_s1 + $0x40] sm:$0xf] }
 0x93a   :  { %v1024_v51 = vpop.permute.xlu1 %1023 }
 0x93b   :  { %v1036_v54 = vadd.f32 %v1024_v51, %v1018_v52  ;;  %v2006_v51 = vmov 6  }
 0x93c   :  { %1953 = vset.pattern.permute.xlu1 %v2006_v51  ;;  %1954 = vset.pattern.permute.xlu0 %v2006_v51 }
 0x93d   :  { %v1039_v60 = vmax.f32 %v1036_v54, 0.0 }
 0x93e   :  { %v1029_v56 = vpop.permute.xlu1 %1028 }
 0x93f   :  { %v1037_v57 = vadd.f32 %v1029_v56, %v1019_v53 }
 0x941   :  { %v1040_v61 = vmax.f32 %v1037_v57, 0.0 }
 0x942   :  { %v1034_v62 = vpop.permute.xlu1 %1033 }
 0x943   :  { %v1911_v63 = vpack.c.bf16 %v1040_v61, %v1039_v60  ;;  %v1038_v3 = vadd.f32 %v1034_v62, %v1020_v59 }
 0x945   :  { %1912 = vmatpush3.bf16.msra.mxu0 %v1911_v63  ;;  %v1041_v5 = vmax.f32 %v1038_v3, 0.0 }
 0x946   :  { %1849 = vmatprep.subr.mxu0 %v1988_v0 }
 0x949   :  { %1850 = vmatpush3.msk.msra.mxu0 %vm296_vm2, %v1041_v5  ;;  %v2009_v5 = vmov 7  }
 0x94a   :  { %1852 = vmatmul.mubr.msk.f32.vlgmr.msra.gmra.mrb[24].mxu0 %vm286_vm3, %v1668_v40  ;;  %1871 = vmatprep.subr.mxu0 %v1988_v0 }
 0x94b   :  { %1854 = vmatprep.mubr.msk.f32.mxu0 %vm1989_vm1, %v1988_v0  ;;  %1872 = vmatpush3.msra.mxu0 %v1990_v2 }
 0x94c   :  { %1916 = vmatprep.subr.bf16.mxu0 %v1994_v58 }
 0x94e   :  { %1855 = vmatmul.mubr.msk.f32.gmra.mrb[26].mxu0 %vm286_vm3, %v1669_v44 }
 0x94f   :  { %1857 = vmatprep.mubr.msk.f32.mxu0 %vm1989_vm1, %v1988_v0 }
 0x952   :  { %1858 = vmatmul.mubr.msk.f32.gmra.mrb[28].mxu0 %vm286_vm3, %v1670_v48 }
 0x953   :  { %1873 = vmatprep.mubr.msk.f32.mxu0 %vm1989_vm1, %v1988_v0 }
 0xa1d   :  { %v2267_v7 = vpop.f32.mrb[24].mxu0 }
 0xa1e   :  { %v1230_v8 = vmul.f32 %v2267_v7, %v2267_v7  ;;  %v1853_v58 = vpop.f32.mrb[25].mxu0  ;;  %1863 = vmatmul.mubr.msk.f32.vlgmr.msra.gmra.mrb[24].mxu1 %vm20_vm0, %v2267_v7 }
 0xa1f   :  { %1865 = vmatprep.mubr.msk.f32.mxu1 %vm1989_vm1, %v1988_v0 }
 0xa20   :  { %1874 = vmatmul.mubr.msk.f32.vlgmr.msra.gmra.mrb[30].mxu0 %vm20_vm0, %v1230_v8 }
 0xa21   :  { %v2276_v9 = vpop.f32.mrb[26].mxu0  ;;  %1876 = vmatprep.mubr.msk.f32.mxu0 %vm1989_vm1, %v1988_v0 }
 0xa22   :  { %v1231_v10 = vmul.f32 %v2276_v9, %v2276_v9  ;;  %v1856_v11 = vpop.f32.mrb[27].mxu0  ;;  %1866 = vmatmul.mubr.msk.f32.gmra.mrb[26].mxu1 %vm20_vm0, %v2276_v9 }
 0xa23   :  { %1868 = vmatprep.mubr.msk.f32.mxu1 %vm1989_vm1, %v1988_v0  ;;  %v2010_v11 = vmov 8  }
 0xa24   :  { %1877 = vmatmul.mubr.msk.f32.gmra.mrb[32].mxu0 %vm20_vm0, %v1231_v10 }
 0xa25   :  { %v2287_v12 = vpop.f32.mrb[28].mxu0  ;;  %1879 = vmatprep.mubr.msk.f32.mxu0 %vm1989_vm1, %v1988_v0 }
 0xa26   :  { %v1232_v13 = vmul.f32 %v2287_v12, %v2287_v12  ;;  %1869 = vmatmul.mubr.msk.f32.gmra.mrb[28].mxu1 %vm20_vm0, %v2287_v12  ;;  %v1859_v14 = vpop.f32.mrb[29].mxu0 }
 0xa27   :  { %1888 = vmatprep.mubr.msk.f32.mxu1 %vm1989_vm1, %v1988_v0 }
 0xa28   :  { %1880 = vmatmul.mubr.msk.f32.gmra.mrb[34].mxu0 %vm20_vm0, %v1232_v13 }
 0xa29   :  { %1901 = vmatprep.mubr.msk.f32.mxu0 %vm1989_vm1, %v1988_v0 }
 0xaf1   :  { %v1213_v15 = vpop.f32.mrb[24].mxu1 }
 0xaf2   :  { %v1227_v1 = vmul.f32 0.125, %v1213_v15  ;;  %v1864_v4 = vpop.f32.mrb[25].mxu1 }
 0xaf3   :  { %v1308_v6 = vpop.f32.mrb[30].mxu0 }
 0xaf4   :  { %v1325_v17 = vmul.f32 %v1227_v1, %v1227_v1  ;;  %v1322_v18 = vmul.f32 0.125, %v1308_v6  ;;  %v1875_v20 = vpop.f32.mrb[31].mxu0 }
 0xaf5   :  { %v1218_v21 = vpop.f32.mrb[26].mxu1 }
 0xaf6   :  { %v1328_v23 = vsub.f32 %v1322_v18, %v1325_v17  ;;  %v1228_v24 = vmul.f32 0.125, %v1218_v21  ;;  %v1867_v25 = vpop.f32.mrb[27].mxu1 }
 0xaf7   :  { %v1313_v26 = vpop.f32.mrb[32].mxu0 }
 0xaf8   :  { %v1331_v27 = vmax.f32 %v1328_v23, 0.0  ;;  %v1326_v28 = vmul.f32 %v1228_v24, %v1228_v24  ;;  %v1323_v29 = vmul.f32 0.125, %v1313_v26  ;;  %v1878_v30 = vpop.f32.mrb[33].mxu0 }
 0xaf9   :  { %v1223_v31 = vpop.f32.mrb[28].mxu1 }
 0xafa   :  { %v1334_v32 = vadd.f32 1e-05, %v1331_v27  ;;  %v1329_v33 = vsub.f32 %v1323_v29, %v1326_v28  ;;  %v1229_v34 = vmul.f32 0.125, %v1223_v31  ;;  %v1870_v35 = vpop.f32.mrb[29].mxu1 }
 0xafb   :  { %v1318_v36 = vpop.f32.mrb[34].mxu0 }
 0xafc   :  { %1976 = vrsqrt.f32 %v1334_v32  ;;  %v1332_v37 = vmax.f32 %v1329_v33, 0.0  ;;  %v1327_v38 = vmul.f32 %v1229_v34, %v1229_v34  ;;  %v1324_v16 = vmul.f32 0.125, %v1318_v36  ;;  %v1881_v19 = vpop.f32.mrb[35].mxu0 }
 0xafe   :  { %v1335_v22 = vadd.f32 1e-05, %v1332_v37  ;;  %v1330_v41 = vsub.f32 %v1324_v16, %v1327_v38 }
 0xb00   :  { %1978 = vrsqrt.f32 %v1335_v22  ;;  %v1333_v43 = vmax.f32 %v1330_v41, 0.0 }
 0xb02   :  { %v1336_v45 = vadd.f32 1e-05, %v1333_v43 }
 0xb04   :  { %1980 = vrsqrt.f32 %v1336_v45 }
 0xb06   :  { %v1977_v47 = vpop.eup %1976 }
 0xb07   :  { %1343 = vrot.lane.b32.xlu0 %v1977_v47, %s2005_s19 }
 0xb0a   :  { %v1979_v49 = vpop.eup %1978 }
 0xb0b   :  { %1345 = vrot.lane.b32.xlu1 %v1979_v49, %s2005_s19 }
 0xb0e   :  { %v1981_v50 = vpop.eup %1980 }
 0xb0f   :  { %1347 = vrot.lane.b32.xlu0 %v1981_v50, %s2005_s19 }
 0xb79   :  { %v1344_v52 = vpop.permute.xlu0 %1343 }
 0xb7a   :  { %v1352_v53 = vmul.f32 %v1344_v52, %v2087_v39 }
 0xb7c   :  { %1358 = vrot.lane.b32.xlu1 %v1352_v53, %s2007_s20 }
 0xb7d   :  { %v1346_v54 = vpop.permute.xlu1 %1345 }
 0xb7e   :  { %v1353_v55 = vmul.f32 %v1346_v54, %v2093_v42 }
 0xb80   :  { %1360 = vrot.lane.b32.xlu0 %v1353_v55, %s2007_s20 }
 0xb81   :  { %v1348_v56 = vpop.permute.xlu0 %1347 }
 0xb82   :  { %v1354_v57 = vmul.f32 %v1348_v56, %v2099_v46  ;;  %v1627_v56 = vlaneseq }
 0xb84   :  { %1362 = vrot.lane.b32.xlu1 %v1354_v57, %s2007_s20 }
 0xbee   :  { %v1359_v59 = vpop.permute.xlu1 %1358 }
 0xbef   :  { %v1367_v60 = vmul.f32 %v1359_v59, %v1227_v1 }
 0xbf1   :  { %1373 = vrot.lane.b32.xlu0 %v1367_v60, %s2008_s21 }
 0xbf2   :  { %v1361_v61 = vpop.permute.xlu0 %1360 }
 0xbf3   :  { %v1368_v62 = vmul.f32 %v1361_v61, %v1228_v24 }
 0xbf5   :  { %1375 = vrot.lane.b32.xlu1 %v1368_v62, %s2008_s21 }
 0xbf6   :  { %v1363_v63 = vpop.permute.xlu1 %1362 }
 0xbf7   :  { %v1369_v3 = vmul.f32 %v1363_v63, %v1229_v34 }
 0xbf9   :  { %1377 = vrot.lane.b32.xlu0 %v1369_v3, %s2008_s21  ;;  %1386 = vperm.xlu1 %1953, %v1352_v53  }
 0xbfd   :  { %1390 = vperm.xlu0 %1954, %v1353_v55   ;;  %1955 = vset.pattern.permute.xlu1 %v2009_v5 }
 0xc01   :  { %1394 = vperm.xlu0 %1954, %v1354_v57   ;;  %v1628_v57 = vshrl.u32 %v1627_v56, 7 }
 0xc03   :  { %v1629_v61 = vsub.s32 0, %v1628_v57 }
 0xc05   :  { %1956 = vset.pattern.permute.xlu0 %v2010_v11 }
 0xc06   :  { %1427 = vperm.xlu0 %1956, %v2087_v39  }
 0xc63   :  { %v1374_v40 = vpop.permute.xlu0 %1373 }
 0xc64   :  { %v1382_v44 = vsub.f32 %v2087_v39, %v1374_v40 }
 0xc66   :  { %1402 = vperm.xlu1 %1955, %v1382_v44  }
 0xc67   :  { %v1376_v48 = vpop.permute.xlu1 %1375 }
 0xc68   :  { %v1383_v8 = vsub.f32 %v2093_v42, %v1376_v48 }
 0xc6a   :  { %1407 = vperm.xlu1 %1955, %v1383_v8  }
 0xc6b   :  { %v1378_v58 = vpop.permute.xlu0 %1377 }
 0xc6c   :  { %v1384_v10 = vsub.f32 %v2099_v46, %v1378_v58 }
 0xc6e   :  { %1412 = vperm.xlu1 %1955, %v1384_v10  }
 0xc72   :  { %1957 = vset.pattern.permute.xlu1 %v2010_v11 }
 0xc73   :  { %1432 = vperm.xlu1 %1957, %v2093_v42  }
 0xc78   :  { %v1387_v13 = vpop.permute.xlu1 %1386 }
 0xc79   :  { %v1397_v1 = vmul.f32 %v1387_v13, %v2267_v7  ;;  %v1681_v7 = vld [vmem:[%s2342_s1 + $0x48] sm:$0xff] }
 0xc7c   :  { %v1391_v14 = vpop.permute.xlu0 %1390 }
 0xc7d   :  { %v1398_v4 = vmul.f32 %v1391_v14, %v2276_v9  ;;  %v1682_v9 = vld [vmem:[%s2342_s1 + $0x50] sm:$0xff] }
 0xc80   :  { %v1395_v17 = vpop.permute.xlu0 %1394 }
 0xc81   :  { %v1399_v46 = vmul.f32 %v1395_v17, %v2287_v12  ;;  %v1683_v12 = vld [vmem:[%s2342_s1 + $0x58] sm:$0xf] }
 0xc85   :  { %v1428_v27 = vpop.permute.xlu0 %1427 }
 0xce5   :  { %v1403_v15 = vpop.permute.xlu1 %1402 }
 0xce6   :  { %v1415_v6 = vadd.f32 %v1403_v15, %v1397_v1 }
 0xce8   :  { %v1418_v21 = vmax.f32 %v1415_v6, 0.0 }
 0xce9   :  { %v1408_v18 = vpop.permute.xlu1 %1407 }
 0xcea   :  { %v1416_v20 = vadd.f32 %v1408_v18, %v1398_v4 }
 0xcec   :  { %v1419_v23 = vmax.f32 %v1416_v20, 0.0 }
 0xced   :  { %v1413_v24 = vpop.permute.xlu1 %1412 }
 0xcee   :  { %v1914_v25 = vpack.c.bf16 %v1419_v23, %v1418_v21  ;;  %v1417_v39 = vadd.f32 %v1413_v24, %v1399_v46 }
 0xcf0   :  { %1915 = vmatpush3.bf16.msra.mxu1 %v1914_v25  ;;  %v1420_v42 = vmax.f32 %v1417_v39, 0.0 }
 0xcf1   :  { %1886 = vmatprep.subr.mxu1 %v1988_v0 }
 0xcf2   :  { %v1433_v29 = vpop.permute.xlu1 %1432 }
 0xcf4   :  { %1887 = vmatpush3.msk.msra.mxu1 %vm296_vm2, %v1420_v42 }
 0xcf5   :  { %1889 = vmatmul.mubr.msk.f32.vlgmr.msra.gmra.mrb[30].mxu1 %vm286_vm3, %v1681_v7 }
 0xcf6   :  { %1891 = vmatprep.mubr.msk.f32.mxu1 %vm1989_vm1, %v1988_v0 }
 0xcf9   :  { %1892 = vmatmul.mubr.msk.f32.gmra.mrb[32].mxu1 %vm286_vm3, %v1682_v9 }
 0xcfa   :  { %1894 = vmatprep.mubr.msk.f32.mxu1 %vm1989_vm1, %v1988_v0 }
 0xcfd   :  { %1895 = vmatmul.mubr.msk.f32.gmra.mrb[34].mxu1 %vm286_vm3, %v1683_v12 }
 0xdc8   :  { %v1517_v26 = vpop.f32.mrb[30].mxu1 }
 0xdc9   :  { %v1890_v28 = vpop.f32.mrb[31].mxu1  ;;  %v1518_v30 = vadd.f32 %v1517_v26, %v1428_v27 }
 0xdcb   :  { %v1530_v34 = vsel %vm20_vm0, %v1518_v30, -inf }
 0xdcc   :  { %v1522_v31 = vpop.f32.mrb[32].mxu1 }
 0xdcd   :  { %v1523_v32 = vadd.f32 %v1522_v31, %v1433_v29  ;;  %v1893_v33 = vpop.f32.mrb[33].mxu1 }
 0xdcf   :  { %v1532_v35 = vsel %vm1531_vm4, %v1523_v32, -inf }
 0xdd0   :  { %v1533_v0 = vmax.f32 %v1530_v34, %v1532_v35  ;;  %v1527_v52 = vpop.f32.mrb[34].mxu1 }
 0xdd1   :  { %v1896_v53 = vpop.f32.mrb[35].mxu1 }
 0xdd2   :  { %v1534_v36 = vrot.slane %v1533_v0, 4 }
 0xdd4   :  { %v1535_v37 = vmax.f32 %v1533_v0, %v1534_v36 }
 0xdd6   :  { %v1536_v38 = vrot.slane %v1535_v37, 2 }
 0xdd8   :  { %v1537_v16 = vmax.f32 %v1535_v37, %v1536_v38 }
 0xdda   :  { %v1538_v19 = vrot.slane %v1537_v16, 1 }
 0xddc   :  { %v1539_v22 = vmax.f32 %v1537_v16, %v1538_v19 }
 0xdde   :  { %v1540_v41 = vsub.f32 %v1518_v30, %v1539_v22  ;;  %v1541_v43 = vsub.f32 %v1523_v32, %v1539_v22 }
 0xde0   :  { %v1542_v45 = vmul.f32 1.442695, %v1540_v41  ;;  %v1544_v47 = vmul.f32 1.442695, %v1541_v43 }
 0xde2   :  { %1982 = vpow2.f32 %v1542_v45 }
 0xde3   :  { %1984 = vpow2.f32 %v1544_v47 }
 0xdec   :  { %v1983_v49 = vpop.eup %1982 }
 0xded   :  { %v1985_v50 = vpop.eup %1984 }
 0xdee   :  { %v1917_v51 = vpack.c.bf16 %v1985_v50, %v1983_v49 }
 0xdf0   :  { %1919 = vmatpush3.bf16.msk.msra.mxu0 %vm1918_vm7, %v1917_v51 }
 0xdf3   :  { %1902 = vmatmul.mubr.msk.f32.vlgmr.msra.gmra.mrb[36].mxu0 %vm1546_vm8, %v1990_v2 }
 0xec6   :  { %v1620_v54 = vpop.f32.mrb[36].mxu0 }
 0xec7   :  { %1986 = vlog2.f32 %v1620_v54  ;;  %v1903_v55 = vpop.f32.mrb[37].mxu0 }
 0xed1   :  { %v1987_v59 = vpop.eup %1986 }
 0xed2   :  { %v1625_v60 = vmul.f32 0.6931472, %v1987_v59 }
 0xed4   :  { %v1626_v62 = vadd.f32 %v1625_v60, %v1539_v22 }
 0xed6   :  { %v1630_v63 = vrot.slane %v1626_v62, %v1629_v61 }
 0xed8   :  { %v1631_v3 = vsub.f32 %v1518_v30, %v1630_v63  ;;  %v1632_v5 = vsub.f32 %v1523_v32, %v1630_v63 }
 0xeda   :  { %1633 = vst.msk [vmem:[%s2343_s3] sm:$0xff] %vm20_vm0, %v1631_v3 }
 0xedb   :  { %1634 = vst.msk [vmem:[%s2343_s3 + $0x8] sm:$0x3] %vm1531_vm4, %v1632_v5 }

</bundles_post_ra>
